<compile_context>
chip_gen: v6e
topology: v6e:2x2x1
jax: 0.10.0
libtpu: 0.0.40
codegen_flags: <defaults>
</compile_context>

<pallas_src>
import jax
import jax.numpy as jnp
from jax.experimental import pallas as pl
from jax.experimental.pallas import tpu as pltpu

NUM_CLASSES = 5
HIDDEN = 128      # first Linear output width (already lane-dense)
LANE = 128        # TPU lane width
SUBLANE = 16      # multiple of 8 (f32) and 16 (bf16) sublane packing


def _round_up(x, m):
    return ((x + m - 1) // m) * m


def _meta_learner_kernel(x_ref, w1_ref, b1_ref, w2_ref, b2_ref, o_ref):
    # Fused MLP hot path for one batch tile: matmul -> bias -> ReLU -> matmul -> bias.
    x = x_ref[...]                                       # (TB, K_pad), f32 or bf16
    h = jnp.dot(x, w1_ref[...],
                preferred_element_type=jnp.float32)      # (TB, 128) f32 accumulate
    h = h + b1_ref[...]                                  # broadcast (1, 128), f32
    h = jnp.maximum(h, 0.0)                              # ReLU
    # Dropout(p=0.3): identity in eval mode.
    h = h.astype(w2_ref.dtype)                           # match MXU operand dtype
    y = jnp.dot(h, w2_ref[...],
                preferred_element_type=jnp.float32)      # (TB, C_pad) f32 accumulate
    y = y + b2_ref[...]                                  # broadcast (1, C_pad), f32
    o_ref[...] = y.astype(o_ref.dtype)


def meta_learner_forward(x, w1, b1, w2, b2, *, block_b=256,
                         compute_dtype=jnp.float32):
    """x: (B, input_size) f32. w1: (input_size, 128), b1: (1, 128),
    w2: (128, num_classes), b2: (1, num_classes).
    Weights stored pre-transposed (in, out) so the kernel does x @ W + b.

    compute_dtype: jnp.float32 (exact) or jnp.bfloat16 (faster on v5e/v6e/v7x;
    accumulation stays f32)."""
    B, D = x.shape
    C = w2.shape[1]
    assert w1.shape == (D, HIDDEN)

    cd = compute_dtype
    # Lane-dense padding of the contraction and output widths.
    K_pad = _round_up(max(D, LANE), LANE)
    C_pad = _round_up(max(C, LANE), LANE)
    # Batch tile: multiple of 16 sublanes, capped at the (padded) batch.
    B_min = _round_up(B, SUBLANE)
    TB = min(_round_up(block_b, SUBLANE), B_min)
    B_pad = _round_up(B, TB)
    grid_b = B_pad // TB

    # Zero-pad operands once in the wrapper (exact zeros so padded columns stay zero).
    x_p = jnp.zeros((B_pad, K_pad), cd).at[:B, :D].set(x.astype(cd))
    w1_p = jnp.zeros((K_pad, HIDDEN), cd).at[:D, :].set(w1.astype(cd))
    b1_p = b1.reshape(1, HIDDEN).astype(jnp.float32)
    w2_p = jnp.zeros((HIDDEN, C_pad), cd).at[:, :C].set(w2.astype(cd))
    b2_p = jnp.zeros((1, C_pad), jnp.float32).at[:, :C].set(
        b2.reshape(1, C).astype(jnp.float32))

    out_p = pl.pallas_call(
        _meta_learner_kernel,
        out_shape=jax.ShapeDtypeStruct((B_pad, C_pad), jnp.float32),
        grid_spec=pltpu.PrefetchScalarGridSpec(
            num_scalar_prefetch=0,
            grid=(grid_b,),
            in_specs=[
                pl.BlockSpec((TB, K_pad), lambda i: (i, 0)),       # batch-tiled
                pl.BlockSpec((K_pad, HIDDEN), lambda i: (0, 0)),   # weights resident
                pl.BlockSpec((1, HIDDEN), lambda i: (0, 0)),
                pl.BlockSpec((HIDDEN, C_pad), lambda i: (0, 0)),
                pl.BlockSpec((1, C_pad), lambda i: (0, 0)),
            ],
            out_specs=pl.BlockSpec((TB, C_pad), lambda i: (i, 0)),  # lane-dense output
        ),
        compiler_params=pltpu.CompilerParams(
            dimension_semantics=("parallel",)),                     # 2-TC sharding on v7x
    )(x_p, w1_p, b1_p, w2_p, b2_p)

    return out_p[:B, :C]


def init_params(key, input_size, num_classes):
    """Deterministic param init mimicking nn.Linear default (uniform +-1/sqrt(fan_in))."""
    k1, k2, k3, k4 = jax.random.split(key, 4)
    bound1 = 1.0 / jnp.sqrt(input_size)
    bound2 = 1.0 / jnp.sqrt(HIDDEN)
    # stored pre-transposed: (in, out)
    w1 = jax.random.uniform(k1, (input_size, HIDDEN), jnp.float32, -bound1, bound1)
    b1 = jax.random.uniform(k2, (1, HIDDEN), jnp.float32, -bound1, bound1)
    w2 = jax.random.uniform(k3, (HIDDEN, num_classes), jnp.float32, -bound2, bound2)
    b2 = jax.random.uniform(k4, (1, num_classes), jnp.float32, -bound2, bound2)
    return w1, b1, w2, b2


if __name__ == "__main__":
    key = jax.random.PRNGKey(0)
    batch = 40               # not a tile multiple on purpose (exercises row padding)
    input_size = 32          # e.g. num_base_models * num_classes stacking features
    kx, kp = jax.random.split(key)
    x = jax.random.normal(kx, (batch, input_size), jnp.float32)
    w1, b1, w2, b2 = init_params(kp, input_size, NUM_CLASSES)

    # plain-JAX reference
    ref = jnp.maximum(x @ w1 + b1, 0.0) @ w2 + b2

    # f32 path (exact semantics), small batch tile to exercise a multi-step grid.
    out = meta_learner_forward(x, w1, b1, w2, b2, block_b=16,
                               compute_dtype=jnp.float32)
    out = jax.block_until_ready(out)
    assert out.shape == (batch, NUM_CLASSES)
    assert jnp.allclose(out, ref, atol=1e-4, rtol=1e-4)

    # bf16 operand path (f32 accumulate) — the fast path on v5e/v6e/v7x.
    out_bf16 = meta_learner_forward(x, w1, b1, w2, b2, block_b=256,
                                    compute_dtype=jnp.bfloat16)
    out_bf16 = jax.block_until_ready(out_bf16)
    assert out_bf16.shape == (batch, NUM_CLASSES)
    assert jnp.allclose(out_bf16, ref, atol=5e-2, rtol=5e-2)

    print("KERNEL_OK")
</pallas_src>

<mosaic_0001>
module attributes {stable_mosaic.version = 11 : i64} {
  func.func @_meta_learner_kernel(%arg0: i32, %arg1: memref<16x128xf32, #tpu.memory_space<vmem>>, %arg2: memref<128x128xf32, #tpu.memory_space<vmem>>, %arg3: memref<1x128xf32, #tpu.memory_space<vmem>>, %arg4: memref<128x128xf32, #tpu.memory_space<vmem>>, %arg5: memref<1x128xf32, #tpu.memory_space<vmem>>, %arg6: memref<16x128xf32, #tpu.memory_space<vmem>>) attributes {dimension_semantics = [#tpu.dimension_semantics<parallel>], iteration_bounds = array<i64: 3>, scalar_prefetch = 0 : i64, scratch_operands = 0 : i64, tpu.core_type = #tpu.core_type<tc>, window_params = [{transform_indices = @transform_0, window_bounds = array<i64: 16, 128>}, {pipeline_mode = #tpu.pipeline_mode<synchronous>, transform_indices = @transform_1, window_bounds = array<i64: 128, 128>}, {pipeline_mode = #tpu.pipeline_mode<synchronous>, transform_indices = @transform_2, window_bounds = array<i64: 1, 128>}, {pipeline_mode = #tpu.pipeline_mode<synchronous>, transform_indices = @transform_3, window_bounds = array<i64: 128, 128>}, {pipeline_mode = #tpu.pipeline_mode<synchronous>, transform_indices = @transform_4, window_bounds = array<i64: 1, 128>}, {transform_indices = @transform_5, window_bounds = array<i64: 16, 128>}]} {
    %c0 = arith.constant 0 : index
    %c0_0 = arith.constant 0 : index
    %0 = vector.load %arg1[%c0, %c0_0] : memref<16x128xf32, #tpu.memory_space<vmem>>, vector<16x128xf32>
    %c0_1 = arith.constant 0 : index
    %c0_2 = arith.constant 0 : index
    %1 = vector.load %arg2[%c0_1, %c0_2] : memref<128x128xf32, #tpu.memory_space<vmem>>, vector<128x128xf32>
    %cst = arith.constant dense<0.000000e+00> : vector<16x128xf32>
    %2 = tpu.matmul %0, %1, %cst {dimension_numbers = #tpu.dot_dimension_numbers<[1], [0], [0], [1], [0, 0, 1, 1], [], []>} : vector<16x128xf32>, vector<128x128xf32>, vector<16x128xf32> -> vector<16x128xf32>
    %c0_3 = arith.constant 0 : index
    %c0_4 = arith.constant 0 : index
    %3 = vector.load %arg3[%c0_3, %c0_4] : memref<1x128xf32, #tpu.memory_space<vmem>>, vector<1x128xf32>
    %4 = vector.broadcast %3 : vector<1x128xf32> to vector<16x128xf32>
    %5 = arith.addf %2, %4 : vector<16x128xf32>
    %cst_5 = arith.constant 0.000000e+00 : f32
    %6 = vector.broadcast %cst_5 : f32 to vector<16x128xf32>
    %7 = arith.maximumf %5, %6 : vector<16x128xf32>
    %c0_6 = arith.constant 0 : index
    %c0_7 = arith.constant 0 : index
    %8 = vector.load %arg4[%c0_6, %c0_7] : memref<128x128xf32, #tpu.memory_space<vmem>>, vector<128x128xf32>
    %cst_8 = arith.constant dense<0.000000e+00> : vector<16x128xf32>
    %9 = tpu.matmul %7, %8, %cst_8 {dimension_numbers = #tpu.dot_dimension_numbers<[1], [0], [0], [1], [0, 0, 1, 1], [], []>} : vector<16x128xf32>, vector<128x128xf32>, vector<16x128xf32> -> vector<16x128xf32>
    %c0_9 = arith.constant 0 : index
    %c0_10 = arith.constant 0 : index
    %10 = vector.load %arg5[%c0_9, %c0_10] : memref<1x128xf32, #tpu.memory_space<vmem>>, vector<1x128xf32>
    %11 = vector.broadcast %10 : vector<1x128xf32> to vector<16x128xf32>
    %12 = arith.addf %9, %11 : vector<16x128xf32>
    %c0_11 = arith.constant 0 : index
    %c0_12 = arith.constant 0 : index
    %13 = vector.load %arg6[%c0_11, %c0_12] : memref<16x128xf32, #tpu.memory_space<vmem>>, vector<16x128xf32>
    tpu.vector_store %arg6[%c0_11, %c0_12], %12 {strides = array<i32>} : memref<16x128xf32, #tpu.memory_space<vmem>>, vector<16x128xf32>,
    return
  }
  func.func @transform_0(%arg0: i32) -> (i32, i32) {
    %c0_i32 = arith.constant 0 : i32
    %c0_i32_0 = arith.constant 0 : i32
    return %arg0, %c0_i32 : i32, i32
  }
  func.func @transform_1(%arg0: i32) -> (i32, i32) {
    %c0_i32 = arith.constant 0 : i32
    %c0_i32_0 = arith.constant 0 : i32
    %c0_i32_1 = arith.constant 0 : i32
    return %c0_i32, %c0_i32_0 : i32, i32
  }
  func.func @transform_2(%arg0: i32) -> (i32, i32) {
    %c0_i32 = arith.constant 0 : i32
    %c0_i32_0 = arith.constant 0 : i32
    %c0_i32_1 = arith.constant 0 : i32
    return %c0_i32, %c0_i32_0 : i32, i32
  }
  func.func @transform_3(%arg0: i32) -> (i32, i32) {
    %c0_i32 = arith.constant 0 : i32
    %c0_i32_0 = arith.constant 0 : i32
    %c0_i32_1 = arith.constant 0 : i32
    return %c0_i32, %c0_i32_0 : i32, i32
  }
  func.func @transform_4(%arg0: i32) -> (i32, i32) {
    %c0_i32 = arith.constant 0 : i32
    %c0_i32_0 = arith.constant 0 : i32
    %c0_i32_1 = arith.constant 0 : i32
    return %c0_i32, %c0_i32_0 : i32, i32
  }
  func.func @transform_5(%arg0: i32) -> (i32, i32) {
    %c0_i32 = arith.constant 0 : i32
    %c0_i32_0 = arith.constant 0 : i32
    return %arg0, %c0_i32 : i32, i32
  }
}

</mosaic_0001>

<bundles_post_ra>
// kernel: tpu_custom_call.1
= control target key start
LH: loop header
LB: loop body
LE: loop exit
PB: predicated region body
PF: predicated region fallthrough
CT: control target
= control target key end

     0   :  { %10 = vsyncpa [#allocation3], 0  ;;  %s1178_s0 = inlined_call_operand.hbm [shape: f32[48,128], index: 0, kind: input, shape index: {}]   ;;  %s1179_s1 = inlined_call_operand.hbm [shape: f32[128,128], index: 1, kind: input, shape index: {}]   ;;  %s1180_s2 = inlined_call_operand.vmem [shape: f32[1,128], index: 2, kind: input, shape index: {}]   ;;  %s1181_s3 = inlined_call_operand.hbm [shape: f32[128,128], index: 3, kind: input, shape index: {}]   ;;  %s1182_s4 = inlined_call_operand.vmem [shape: f32[1,128], index: 4, kind: input, shape index: {}]   ;;  %s1183_s5 = inlined_call_operand.hbm [shape: f32[48,128], index: 5, kind: output, shape index: {}]  }
   0x1   :  { %12 = vsyncpa [#allocation3 + $0x1], 0 }
   0x2   :  { %13 = vsyncpa [#allocation6], 0 }
   0x3   :  { %14 = vsyncpa [#allocation4], 0 }
   0x4   :  { %16 = vsyncpa [#allocation4 + $0x1], 0  ;;  %s969_s18 = smov 0   ;;  %s971_s19 = smov 0  }
   0x5   :  { %s973_s20 = smov 0   ;;  %s975_s21 = smov 0  }
   0x6 LB: > { %s990_s22 = sadd.s32 4294967295, %s929_s21   ;;  %s582_s23 = sadd.s32 4294967294, %s929_s21   ;;  %s929_s21 = sphi %s975_s21, %s1205_s21   ;;  %s925_s20 = sphi %s973_s20, %s1204_s20   ;;  %s921_s19 = sphi %s971_s19, %s1203_s19   ;;  %s917_s18 = sphi %s969_s18, %s1202_s18  }
   0x7   : > { %p42_p0 = scmp.ne.s32.totalorder %s921_s19, %s917_s18  ;;  %p1184_p1 = scmp.eq.s32.totalorder %s990_s22, 0 }
   0x8   : > { %p150_p2 = scmp.eq.s32.totalorder %s990_s22, 2  ;;  %p156_p3 = scmp.eq.s32.totalorder %s582_s23, 2 }
   0x9   : > { %p999_p4 = por %p1184_p1, %p42_p0  ;;  %p583_p5 = scmp.ge.s32.totalorder %s929_s21, 1 }
   0xa   : > { %p1004_p6 = por %p156_p3, %p42_p0  ;;  %p163_p7 = scmp.lt.s32.totalorder %s929_s21, 4 }
   0xb   : > { %s1189_s24 = scalar_select %p999_p4, 1, 0 }
   0xc   : > { %s1190_s25 = scalar_select %p1004_p6, 1, 0 }
   0xd   : > { %p1009_p8 = pnand %p583_p5, %p163_p7  ;;  %s931_s27 = smov [#allocation5]  }
   0xe   : > { %s175_s28 = sshll.u32 %s931_s27, 4  ;;  %s932_s30 = smov [#allocation7]   ;;  %s176_s28 = int_to_ptr.vmem [resolvable:$true] %s175_s28 }
   0xf   : > { %s1191_s26 = scalar_select %p1009_p8, 1, 0 }
  0x10   : > { %p722_p9 = pneg %p1009_p8  ;;  %s191_s6 = sshll.u32 %s932_s30, 4  ;;  %s192_s6 = int_to_ptr.vmem [resolvable:$true] %s191_s6 }
  0x11   : > { %s792_s7 = scalar_lea.vmem %s176_s28, 2048  ;;  %p800_p3 = scmp.lt.s32.totalorder %s176_s28, %s176_s28 }
  0x12   : > { %p1017_p10 = pnand %p722_p9, %p1184_p1  ;;  %p793_p12 = scmp.ne.s32.totalorder %s176_s28, %s792_s7 }
  0x13   : > { %p801_p5 = scmp.lt.s32.totalorder %s792_s7, %s792_s7 }
  0x14   : > { %p783_p11 = pneg %p1017_p10 }
  0x15   : > { %p802_p7 = por %p801_p5, %p800_p3 }
  0x16   : > { %p795_p13 = pnand %p793_p12, %p783_p11 }
  0x18   : > { %p796_p0 = pneg %p795_p13 }
  0x1a   : > { %p803_p9 = pnand %p802_p7, %p796_p0 }
  0x1c   : > { %806 = shalt.err (!%p803_p9)
}
  0x1d   : > { %s1185_s8 = smov 128   ;;  %s934_s9 = smov 8  }
  0x1e   : > { %725 = dma.hbm_to_vmem [thread:$0]  (!%p1017_p10), %s1179_s1, 2048, %s176_s28, [#allocation6], %s1185_s8, %s1185_s8, %s934_s9  }
  0x1f   : > { %s818_s12 = scalar_lea.vmem %s192_s6, 2048  ;;  %p826_p0 = scmp.lt.s32.totalorder %s192_s6, %s192_s6 }
  0x20   : > { %p819_p12 = scmp.ne.s32.totalorder %s192_s6, %s818_s12  ;;  %p827_p5 = scmp.lt.s32.totalorder %s818_s12, %s818_s12 }
  0x22   : > { %p821_p13 = pnand %p819_p12, %p783_p11  ;;  %p828_p7 = por %p827_p5, %p826_p0 }
  0x24   : > { %p822_p3 = pneg %p821_p13 }
  0x26   : > { %p829_p9 = pnand %p828_p7, %p822_p3 }
  0x28   : > { %832 = shalt.err (!%p829_p9)
}
  0x29   : > { %728 = dma.hbm_to_vmem [thread:$0]  (!%p1017_p10), %s1181_s3, 2048, %s192_s6, [#allocation6], %s1185_s8, %s1185_s8, %s934_s9  }
  0x2a   : > { %s1046_s15 = sadd.s32 1, %s929_s21   ;;  %s29_s16 = sadd.s32 1, %s925_s20 }
  0x2b   : > { %s26_s17 = ssub.s32 %s929_s21, %s1046_s15  ;;  %p36_p11 = scmp.ne.s32.totalorder %s925_s20, %s921_s19 }
  0x2c   : > { %p27_p12 = scmp.eq.s32.totalorder %s26_s17, 0  ;;  %p37_p13 = scmp.eq.s32.totalorder %s929_s21, 0 }
  0x2d   : > { %p1056_p3 = por %p150_p2, %p36_p11  ;;  %p739_p0 = scmp.lt.s32.totalorder %s929_s21, 3 }
  0x2e   : > { %s1062_s27 = scalar_select %p27_p12, %s925_s20, %s29_s16  }
  0x2f   : > { %s1193_s23 = scalar_select %p1056_p3, 1, 0 }
  0x30   : > { %p38_p5 = por %p37_p13, %p36_p11  ;;  %s208_s28 = sand.u32 1, %s925_s20  }
  0x31   : > { %s587_s29 = sshll.u32 %s208_s28, 4  ;;  %s602_s30 = sshll.u32 %s929_s21, 8 }
  0x32   : > { %s1069_s10 = scalar_lea.hbm %s1178_s0, %s602_s30  ;;  %s212_s11 = scalar_lea.vmem [#allocation2], %s587_s29 }
  0x33   : > { %s219_s12 = sshll.u32 %s212_s11, 4  ;;  %p1073_p2 = pnand %p739_p0, %p38_p5  ;;  %s1071_s12 = int_to_ptr.vmem [resolvable:$true] %s219_s12 }
  0x34   : > { %s1077_s14 = scalar_lea.sflag [#allocation3], %s208_s28  ;;  %s833_s16 = scalar_lea.hbm %s1069_s10, 256 }
  0x35   : > { %p834_p10 = scmp.ne.s32.totalorder %s1069_s10, %s833_s16  ;;  %p835_p7 = pneg %p1073_p2 }
  0x36   : > { %s838_s29 = scalar_lea.hbm %s1178_s0, 768  ;;  %p839_p12 = scmp.lt.s32.totalorder %s1069_s10, %s1178_s0 }
  0x37   : > { %p836_p9 = pnand %p835_p7, %p834_p10  ;;  %p840_p13 = scmp.lt.s32.totalorder %s838_s29, %s833_s16 }
  0x39   : > { %p837_p11 = pneg %p836_p9  ;;  %p841_p0 = por %p840_p13, %p839_p12 }
  0x3b   : > { %p842_p5 = pnand %p841_p0, %p837_p11 }
  0x3d   : > { %845 = shalt.err (!%p842_p5)
}
  0x3e   : > { %s846_s28 = scalar_lea.vmem %s1071_s12, 256  ;;  %s935_s11 = smov [#allocation2]  }
  0x3f   : > { %p847_p1 = scmp.ne.s32.totalorder %s1071_s12, %s846_s28  ;;  %s851_s8 = sshll.u32 %s935_s11, 4  ;;  %s852_s8 = int_to_ptr.vmem [resolvable:$false] %s851_s8 }
  0x40   : > { %s853_s17 = scalar_lea.vmem %s852_s8, 512  ;;  %p854_p9 = scmp.lt.s32.totalorder %s1071_s12, %s852_s8 }
  0x41   : > { %p849_p6 = pnand %p847_p1, %p835_p7  ;;  %p855_p3 = scmp.lt.s32.totalorder %s853_s17, %s846_s28 }
  0x43   : > { %p850_p10 = pneg %p849_p6  ;;  %p856_p4 = por %p855_p3, %p854_p9 }
  0x45   : > { %p857_p8 = pnand %p856_p4, %p850_p10 }
  0x47   : > { %860 = shalt.err (!%p857_p8)
}
  0x48   : > { %s1195_s16 = smov 128   ;;  %p1196_p1 = scmp.ne.s32.totalorder %s1191_s26, 0 }
  0x49   : > { %732 = dma.hbm_to_vmem [thread:$0]  (!%p1073_p2), %s1069_s10, 256, %s1071_s12, %s1077_s14, %s1195_s16, %s1195_s16, %s934_s9  }
  0x4a   : > { %231 = sbr.rel (%p1196_p1) target bundleno = 527 (0x20f), region = 40  ;;  %s1104_s30 = sand.u32 (!%p1196_p1), 1, %s921_s19  }
  0x4b   : > { %s591_s8 = sshll.u32 (!%p1196_p1), %s1104_s30, 4  ;;  %s234_s29 = scalar_lea.sflag (!%p1196_p1), [#allocation3], %s1104_s30 }
  0x4c   : > { %s1110_s13 = scalar_lea.vmem (!%p1196_p1), [#allocation2], %s591_s8  ;;  %p1197_p4 = scmp.ne.s32.totalorder (!%p1196_p1), %s1189_s24, 0 }
  0x4f   : > { %904 = dma.done.wait (%p1197_p4), %s234_s29, 256  }
  0x50   : > { %906 = vsyncadd (%p1197_p4), %s234_s29, 4294967040  ;;  %p1198_p6 = scmp.eq.s32.totalorder %s990_s22, 0 }
  0x52   : > { %908 = dma.done.wait (%p1198_p6), [#allocation6], 4096   ;;  %p1199_p8 = pmov %p1198_p6 }
  0x53   : > { %v291_v0 = vld [vmem:[#allocation5 + $0x78] sm:$0xff]  ;;  %v290_v1 = vld [vmem:[#allocation5 + $0x70] sm:$0xff]  ;;  %v289_v2 = vld [vmem:[#allocation5 + $0x68] sm:$0xff]  ;;  %s271_s12 = scalar_lea.vmem [#allocation8], %s591_s8  ;;  %s603_s6 = sshll.u32 %s990_s22, 8 }
  0x54   : > { %910 = vsyncadd (%p1199_p8), [#allocation6], 4294963200  ;;  %640 = vmatprep.subr.mxu0 %v291_v0  ;;  %v288_v3 = vld [vmem:[#allocation5 + $0x60] sm:$0xff]  ;;  %v287_v5 = vld [vmem:[#allocation5 + $0x58] sm:$0xff]  ;;  %s490_s14 = sshll.u32 %s271_s12, 4  ;;  %s1136_s11 = scalar_lea.hbm %s1183_s5, %s603_s6  ;;  %s1131_s14 = int_to_ptr.vmem [resolvable:$true] %s490_s14 }
  0x55   : > { %641 = vmatpush3.msra.mxu0 %v291_v0  ;;  %v274_v4 = vld [vmem:[%s1110_s13] sm:$0xff]  ;;  %v391_v6 = vld [vmem:[#allocation7 + $0x78] sm:$0xff]  ;;  %v389_v9 = vld [vmem:[#allocation7 + $0x68] sm:$0xff]  ;;  %s477_s17 = scalar_lea.sflag [#allocation4], %s1104_s30  ;;  %s861_s16 = scalar_lea.vmem %s1131_s14, 256 }
  0x56   : > { %642 = vmatprep.subr.mxu0 %v290_v1  ;;  %672 = vmatprep.mubr.f32.mxu0 %v274_v4  ;;  %v390_v7 = vld [vmem:[#allocation7 + $0x70] sm:$0xff]  ;;  %v285_v10 = vld [vmem:[#allocation5 + $0x48] sm:$0xff]  ;;  %v388_v11 = vld [vmem:[#allocation7 + $0x60] sm:$0xff]  ;;  %p862_p3 = scmp.ne.s32.totalorder %s1131_s14, %s861_s16  ;;  %p1200_p2 = scmp.ne.s32.totalorder %s1193_s23, 0 }
  0x57   : > { %643 = vmatpush3.msra.mxu0 %v290_v1  ;;  %675 = vmatprep.subr.mxu1 %v391_v6  ;;  %v286_v8 = vld [vmem:[#allocation5 + $0x50] sm:$0xff]  ;;  %v284_v12 = vld [vmem:[#allocation5 + $0x40] sm:$0xff]  ;;  %v387_v13 = vld [vmem:[#allocation7 + $0x58] sm:$0xff]  ;;  %s936_s22 = smov [#allocation8]  }
  0x58   : > { %644 = vmatprep.subr.mxu0 %v289_v2  ;;  %676 = vmatpush3.msra.mxu1 %v391_v6  ;;  %v283_v14 = vld [vmem:[#allocation5 + $0x38] sm:$0xff]  ;;  %v386_v15 = vld [vmem:[#allocation7 + $0x50] sm:$0xff]  ;;  %v385_v17 = vld [vmem:[#allocation7 + $0x48] sm:$0xff]  ;;  %p863_p7 = pnand %p862_p3, %p1200_p2  ;;  %s865_s8 = sshll.u32 %s936_s22, 4  ;;  %s866_s8 = int_to_ptr.vmem [resolvable:$false] %s865_s8 }
  0x59   : > { %645 = vmatpush3.msra.mxu0 %v289_v2  ;;  %677 = vmatprep.subr.mxu1 %v390_v7  ;;  %v282_v16 = vld [vmem:[#allocation5 + $0x30] sm:$0xff]  ;;  %v281_v18 = vld [vmem:[#allocation5 + $0x28] sm:$0xff]  ;;  %v384_v19 = vld [vmem:[#allocation7 + $0x40] sm:$0xff]  ;;  %s867_s29 = scalar_lea.vmem %s866_s8, 512  ;;  %p868_p12 = scmp.lt.s32.totalorder %s1131_s14, %s866_s8 }
  0x5a   : > { %646 = vmatprep.subr.mxu0 %v288_v3  ;;  %678 = vmatpush3.msra.mxu1 %v390_v7  ;;  %v280_v20 = vld [vmem:[#allocation5 + $0x20] sm:$0xff]  ;;  %v383_v21 = vld [vmem:[#allocation7 + $0x38] sm:$0xff]  ;;  %v382_v23 = vld [vmem:[#allocation7 + $0x30] sm:$0xff]  ;;  %p864_p11 = pneg %p863_p7  ;;  %p869_p13 = scmp.lt.s32.totalorder %s867_s29, %s861_s16 }
  0x5b   : > { %647 = vmatpush3.msra.mxu0 %v288_v3  ;;  %679 = vmatprep.subr.mxu1 %v389_v9  ;;  %v279_v22 = vld [vmem:[#allocation5 + $0x18] sm:$0xff]  ;;  %v278_v24 = vld [vmem:[#allocation5 + $0x10] sm:$0xff]  ;;  %v381_v25 = vld [vmem:[#allocation7 + $0x28] sm:$0xff] }
  0x5c   : > { %648 = vmatprep.subr.mxu0 %v287_v5  ;;  %680 = vmatpush3.msra.mxu1 %v389_v9  ;;  %v277_v26 = vld [vmem:[#allocation5 + $0x8] sm:$0xff]  ;;  %v380_v27 = vld [vmem:[#allocation7 + $0x20] sm:$0xff]  ;;  %v379_v30 = vld [vmem:[#allocation7 + $0x18] sm:$0xff]  ;;  %p870_p0 = por %p869_p13, %p868_p12 }
  0x5d   : > { %649 = vmatpush3.msra.mxu0 %v287_v5  ;;  %681 = vmatprep.subr.mxu1 %v388_v11  ;;  %v276_v28 = vld [vmem:[#allocation5] sm:$0xff]  ;;  %v275_v29 = vld [vmem:[%s1110_s13 + $0x8] sm:$0xff]  ;;  %v378_v31 = vld [vmem:[#allocation7 + $0x10] sm:$0xff] }
  0x5e   : > { %650 = vmatprep.subr.mxu0 %v286_v8  ;;  %682 = vmatpush3.msra.mxu1 %v388_v11  ;;  %v377_v32 = vld [vmem:[#allocation7 + $0x8] sm:$0xff]  ;;  %v376_v33 = vld [vmem:[#allocation7] sm:$0xff]  ;;  %p871_p5 = pnand %p870_p0, %p864_p11 }
  0x5f   : > { %651 = vmatpush3.msra.mxu0 %v286_v8  ;;  %683 = vmatprep.subr.mxu1 %v387_v13  ;;  %v595_v34 = vld [vmem:[%s1180_s2] ss:$0 sm:$0xff] }
  0x60   : > { %652 = vmatprep.subr.mxu0 %v285_v10  ;;  %684 = vmatpush3.msra.mxu1 %v387_v13  ;;  %v596_v41 = vld [vmem:[%s1182_s4] ss:$0 sm:$0xff] }
  0x61   : > { %653 = vmatpush3.msra.mxu0 %v285_v10  ;;  %685 = vmatprep.subr.mxu1 %v386_v15 }
  0x62   : > { %654 = vmatprep.subr.mxu0 %v284_v12  ;;  %686 = vmatpush3.msra.mxu1 %v386_v15 }
  0x63   : > { %655 = vmatpush3.msra.mxu0 %v284_v12  ;;  %687 = vmatprep.subr.mxu1 %v385_v17 }
  0x64   : > { %656 = vmatprep.subr.mxu0 %v283_v14  ;;  %688 = vmatpush3.msra.mxu1 %v385_v17 }
  0x65   : > { %657 = vmatpush3.msra.mxu0 %v283_v14  ;;  %689 = vmatprep.subr.mxu1 %v384_v19 }
  0x66   : > { %658 = vmatprep.subr.mxu0 %v282_v16  ;;  %690 = vmatpush3.msra.mxu1 %v384_v19 }
  0x67   : > { %659 = vmatpush3.msra.mxu0 %v282_v16  ;;  %691 = vmatprep.subr.mxu1 %v383_v21 }
  0x68   : > { %660 = vmatprep.subr.mxu0 %v281_v18  ;;  %692 = vmatpush3.msra.mxu1 %v383_v21 }
  0x69   : > { %661 = vmatpush3.msra.mxu0 %v281_v18  ;;  %693 = vmatprep.subr.mxu1 %v382_v23 }
  0x6a   : > { %662 = vmatprep.subr.mxu0 %v280_v20  ;;  %694 = vmatpush3.msra.mxu1 %v382_v23 }
  0x6b   : > { %663 = vmatpush3.msra.mxu0 %v280_v20  ;;  %695 = vmatprep.subr.mxu1 %v381_v25 }
  0x6c   : > { %664 = vmatprep.subr.mxu0 %v279_v22  ;;  %696 = vmatpush3.msra.mxu1 %v381_v25 }
  0x6d   : > { %665 = vmatpush3.msra.mxu0 %v279_v22  ;;  %697 = vmatprep.subr.mxu1 %v380_v27 }
  0x6e   : > { %666 = vmatprep.subr.mxu0 %v278_v24  ;;  %698 = vmatpush3.msra.mxu1 %v380_v27 }
  0x6f   : > { %667 = vmatpush3.msra.mxu0 %v278_v24  ;;  %699 = vmatprep.subr.mxu1 %v379_v30 }
  0x70   : > { %668 = vmatprep.subr.mxu0 %v277_v26  ;;  %700 = vmatpush3.msra.mxu1 %v379_v30 }
  0x71   : > { %669 = vmatpush3.msra.mxu0 %v277_v26  ;;  %701 = vmatprep.subr.mxu1 %v378_v31 }
  0x72   : > { %670 = vmatprep.subr.mxu0 %v276_v28  ;;  %702 = vmatpush3.msra.mxu1 %v378_v31 }
  0x73   : > { %671 = vmatpush3.msra.mxu0 %v276_v28  ;;  %703 = vmatprep.subr.mxu1 %v377_v32 }
  0x74   : > { %673 = vmatmul.mubr.f32.vlgmr.msra.gmra.mxu0 %v275_v29  ;;  %704 = vmatpush3.msra.mxu1 %v377_v32 }
  0x75   : > { %705 = vmatprep.subr.mxu1 %v376_v33 }
  0x76   : > { %706 = vmatpush3.msra.mxu1 %v376_v33 }
 0x134   : > { %v674_v35 = vpop.f32.mrf.mxu0 }
 0x135   : > { %v371_v36 = vadd.f32 %v674_v35, %v595_v34 }
 0x136   : > { %v365_v37 = vpop.f32.mrf.mxu0 }
 0x137   : > { %v366_v38 = vadd.f32 %v595_v34, %v365_v37  ;;  %v375_v40 = vmax.f32 %v371_v36, 0.0 }
 0x139   : > { %v374_v39 = vmax.f32 %v366_v38, 0.0 }
 0x13b   : > { %707 = vmatprep.mubr.f32.mxu1 %v374_v39 }
 0x13c   : > { %708 = vmatmul.mubr.f32.vlgmr.msra.gmra.mxu1 %v375_v40 }
 0x1fc   : > { %v709_v42 = vpop.f32.mrf.mxu1 }
 0x1fd   : > { %v471_v43 = vadd.f32 %v709_v42, %v596_v41 }
 0x1fe   : > { %v465_v44 = vpop.f32.mrf.mxu1 }
 0x1ff   : > { %475 = vst [vmem:[%s271_s12 + $0x8] sm:$0xff] %v471_v43  ;;  %v466_v45 = vadd.f32 %v596_v41, %v465_v44 }
 0x201   : > { %474 = vst [vmem:[%s271_s12] sm:$0xff] %v466_v45 }
 0x202   : > { %874 = shalt.err (!%p871_p5)
}
 0x203   : > { %s875_s13 = scalar_lea.hbm %s1136_s11, 256  ;;  %s879_s9 = scalar_lea.hbm %s1183_s5, 768 }
 0x204   : > { %p876_p10 = scmp.ne.s32.totalorder %s1136_s11, %s875_s13  ;;  %p880_p4 = scmp.lt.s32.totalorder %s1136_s11, %s1183_s5 }
 0x205   : > { %p881_p6 = scmp.lt.s32.totalorder %s879_s9, %s875_s13 }
 0x206   : > { %p877_p9 = pnand %p876_p10, %p1200_p2 }
 0x207   : > { %p882_p8 = por %p881_p6, %p880_p4 }
 0x208   : > { %p878_p1 = pneg %p877_p9 }
 0x20a   : > { %p883_p3 = pnand %p882_p8, %p878_p1 }
 0x20c   : > { %886 = shalt.err (!%p883_p3)
}
 0x20d   : > { %s937_s6 = smov 128   ;;  %s938_s7 = smov 8  }
 0x20e   : > { %720 = dma.vmem_to_hbm [thread:$0]  (%p1200_p2), %s1131_s14, 256, %s1136_s11, %s477_s17, %s937_s6, %s937_s6, %s938_s7  }
 0x20f PF: > { %p742_p7 = scmp.ge.s32.totalorder %s929_s21, 2  ;;  %s505_s28 = sand.u32 1, %s917_s18  }
 0x210   : > { %p1201_p11 = scmp.ne.s32.totalorder %s1190_s25, 0  ;;  %s506_s16 = scalar_lea.sflag [#allocation4], %s505_s28 }
 0x212   : > { %p734_p12 = pnand %p742_p7, %p1201_p11 }
 0x214   : > { %p735_p13 = pneg %p734_p12 }
 0x216   : > { %912 = dma.done.wait (%p735_p13), %s506_s16, 256  }
 0x217   : > { %914 = vsyncadd (%p735_p13), %s506_s16, 4294967040  ;;  %p19_p0 = scmp.ge.s32.totalorder %s1046_s15, 5   ;;  %s1202_s18 = smov %s921_s19 }
 0x218   : > { %s1203_s19 = smov %s925_s20  ;;  %s1204_s20 = smov %s1062_s27 }
 0x219   : > { %s1205_s21 = smov %s1046_s15  ;;  %21 = sbr.rel (!%p19_p0) target bundleno = 6 (0x6), region = 93 }
 0x21e   :  { %511 = vsyncpa [#allocation3], 1 }
 0x21f   :  { %513 = vsyncpa [#allocation3 + $0x1], 1 }
 0x220   :  { %514 = vsyncpa [#allocation6], 1 }
 0x221   :  { %515 = vsyncpa [#allocation4], 1 }
 0x222   :  { %517 = vsyncpa [#allocation4 + $0x1], 1 }

</bundles_post_ra>
